<compile_context>
chip_gen: v5e
topology: v5e:2x2
jax: 0.10.0
libtpu: 0.0.40
codegen_flags: <defaults>
</compile_context>

<pallas_src>
import numpy as np
import jax
import jax.numpy as jnp
from jax.experimental import pallas as pl
from jax.experimental.pallas import tpu as pltpu


# ----------------------------------------------------------------------------
# Host-side construction of the (exact PyTorch) resampling matrices.
# ----------------------------------------------------------------------------
def _adaptive_pool_matrix(out_size: int, in_size: int) -> np.ndarray:
    """Row i averages input indices [floor(i*in/out), ceil((i+1)*in/out))."""
    P = np.zeros((out_size, in_size), dtype=np.float32)
    for i in range(out_size):
        s = (i * in_size) // out_size
        e = -((-(i + 1) * in_size) // out_size)  # ceil((i+1)*in/out)
        P[i, s:e] = 1.0 / float(e - s)
    return P


def _bilinear_matrix(out_size: int, in_size: int) -> np.ndarray:
    """F.interpolate(mode='bilinear', align_corners=False) as a (out, in) matrix."""
    M = np.zeros((out_size, in_size), dtype=np.float32)
    scale = in_size / out_size
    for i in range(out_size):
        src = max((i + 0.5) * scale - 0.5, 0.0)
        i0 = int(np.floor(src))
        i1 = min(i0 + 1, in_size - 1)
        l1 = src - i0
        M[i, i0] += 1.0 - l1
        M[i, i1] += l1
    return M


def _fold_bn(conv_w: np.ndarray, gamma, beta, mean, var, eps: float = 1e-5):
    """Fold BatchNorm2d into the preceding bias-free 1x1 conv."""
    scale = gamma / np.sqrt(var + eps)
    w = (conv_w * scale[:, None]).astype(np.float32)
    b = (beta - scale * mean).reshape(-1, 1).astype(np.float32)
    return w, b


# ----------------------------------------------------------------------------
# Pallas kernel: one batch element per grid step, everything on (C, H*W) slabs.
# ----------------------------------------------------------------------------
def _l_laf_kernel(pkt_ref, bkt_ref, w1_ref, b1_ref, wfa_ref, wfb_ref, wfc_ref,
                  bf_ref, x0_ref, x1_ref, x2_ref, out_ref):
    # Branch A: adaptive average pool of x[0]          -> (Cout, H*W)
    pooled = jnp.dot(x0_ref[0], pkt_ref[...], preferred_element_type=jnp.float32)
    # Branch C: bilinear upsample of x[2]              -> (Cout, H*W)
    upsampled = jnp.dot(x2_ref[0], bkt_ref[...], preferred_element_type=jnp.float32)
    # Branch B: cv1 = fused 1x1 conv + BN + ReLU on x[1] -> (Cout, H*W)
    y1 = jnp.dot(w1_ref[...], x1_ref[0], preferred_element_type=jnp.float32) + b1_ref[...]
    y1 = jnp.maximum(y1, 0.0)
    # cv_fuse applied to the *virtual* concat (its weight pre-split per branch).
    z = (jnp.dot(wfa_ref[...], pooled, preferred_element_type=jnp.float32)
         + jnp.dot(wfb_ref[...], y1, preferred_element_type=jnp.float32)
         + jnp.dot(wfc_ref[...], upsampled, preferred_element_type=jnp.float32)
         + bf_ref[...])
    out_ref[0] = jnp.maximum(z, 0.0).astype(out_ref.dtype)


def l_laf(x0, x1, x2, w1, b1, wfa, wfb, wfc, bf):
    """Fused L_LAF forward. w1/b1 = folded cv1; wfa/wfb/wfc/bf = folded cv_fuse split."""
    B, C0, H0, W0 = x0.shape
    B1, Cin, H, W = x1.shape
    B2, C2, H2, W2 = x2.shape
    Cout = w1.shape[0]
    assert B == B1 == B2, "batch dims must match"
    assert C0 == Cout and C2 == Cout, "x[0]/x[2] must carry out_channels channels"

    # Resampling matrices, fused across H and W (Kronecker) and transposed so each
    # branch is a single right-matmul on a lane-dense (C, spatial) slab.
    pkt = jnp.asarray(np.kron(_adaptive_pool_matrix(H, H0),
                              _adaptive_pool_matrix(W, W0)).T)   # (H0*W0, H*W)
    bkt = jnp.asarray(np.kron(_bilinear_matrix(H, H2),
                              _bilinear_matrix(W, W2)).T)        # (H2*W2, H*W)

    x0f = x0.reshape(B, C0, H0 * W0)
    x1f = x1.reshape(B, Cin, H * W)
    x2f = x2.reshape(B, C2, H2 * W2)

    out_flat = pl.pallas_call(
        _l_laf_kernel,
        out_shape=jax.ShapeDtypeStruct((B, Cout, H * W), x1.dtype),
        grid_spec=pltpu.PrefetchScalarGridSpec(
            num_scalar_prefetch=0,
            grid=(B,),
            in_specs=[
                pl.BlockSpec((H0 * W0, H * W), lambda b: (0, 0)),   # pooling matrix
                pl.BlockSpec((H2 * W2, H * W), lambda b: (0, 0)),   # bilinear matrix
                pl.BlockSpec((Cout, Cin), lambda b: (0, 0)),        # cv1 weight (BN-folded)
                pl.BlockSpec((Cout, 1), lambda b: (0, 0)),          # cv1 bias
                pl.BlockSpec((Cout, Cout), lambda b: (0, 0)),       # cv_fuse weight (pool part)
                pl.BlockSpec((Cout, Cout), lambda b: (0, 0)),       # cv_fuse weight (cv1 part)
                pl.BlockSpec((Cout, Cout), lambda b: (0, 0)),       # cv_fuse weight (interp part)
                pl.BlockSpec((Cout, 1), lambda b: (0, 0)),          # cv_fuse bias
                pl.BlockSpec((1, C0, H0 * W0), lambda b: (b, 0, 0)),
                pl.BlockSpec((1, Cin, H * W), lambda b: (b, 0, 0)),
                pl.BlockSpec((1, C2, H2 * W2), lambda b: (b, 0, 0)),
            ],
            out_specs=pl.BlockSpec((1, Cout, H * W), lambda b: (b, 0, 0)),
        ),
        compiler_params=pltpu.CompilerParams(
            dimension_semantics=("parallel",),
        ),
    )(pkt, bkt, w1, b1, wfa, wfb, wfc, bf, x0f, x1f, x2f)

    return out_flat.reshape(B, Cout, H, W)


# ----------------------------------------------------------------------------
# Pure numpy reference (direct PyTorch semantics, BN applied UNfused).
# ----------------------------------------------------------------------------
def _ref_adaptive_avg_pool2d(x, out_h, out_w):
    B, C, H, W = x.shape
    out = np.zeros((B, C, out_h, out_w), dtype=np.float32)
    for i in range(out_h):
        hs = (i * H) // out_h
        he = -((-(i + 1) * H) // out_h)
        for j in range(out_w):
            ws = (j * W) // out_w
            we = -((-(j + 1) * W) // out_w)
            out[:, :, i, j] = x[:, :, hs:he, ws:we].mean(axis=(2, 3))
    return out


def _ref_bilinear_resize(x, out_h, out_w):
    B, C, H, W = x.shape
    out = np.zeros((B, C, out_h, out_w), dtype=np.float32)
    sh, sw = H / out_h, W / out_w
    for i in range(out_h):
        si = max((i + 0.5) * sh - 0.5, 0.0)
        i0 = int(np.floor(si)); i1 = min(i0 + 1, H - 1); li = si - i0
        for j in range(out_w):
            sj = max((j + 0.5) * sw - 0.5, 0.0)
            j0 = int(np.floor(sj)); j1 = min(j0 + 1, W - 1); lj = sj - j0
            out[:, :, i, j] = ((1 - li) * (1 - lj) * x[:, :, i0, j0]
                               + (1 - li) * lj * x[:, :, i0, j1]
                               + li * (1 - lj) * x[:, :, i1, j0]
                               + li * lj * x[:, :, i1, j1])
    return out


def _ref_simconv(x, conv_w, gamma, beta, mean, var, eps=1e-5):
    y = np.einsum('oi,bihw->bohw', conv_w, x)
    y = (y - mean.reshape(1, -1, 1, 1)) / np.sqrt(var.reshape(1, -1, 1, 1) + eps)
    y = y * gamma.reshape(1, -1, 1, 1) + beta.reshape(1, -1, 1, 1)
    return np.maximum(y, 0.0)


def _ref_l_laf(x0, x1, x2, cv1_params, cvf_params):
    H, W = x1.shape[2], x1.shape[3]
    p = _ref_adaptive_avg_pool2d(x0, H, W)
    u = _ref_bilinear_resize(x2, H, W)
    y1 = _ref_simconv(x1, *cv1_params)
    cat = np.concatenate([p, y1, u], axis=1)
    return _ref_simconv(cat, *cvf_params)


if __name__ == "__main__":
    key = jax.random.PRNGKey(0)
    keys = jax.random.split(key, 16)

    # Small shapes consistent with the module: x[1] sets (H, W); x[0] is the
    # higher-resolution map (non-divisible pool ratio), x[2] the lower-resolution
    # map (non-divisible bilinear ratio). Cout channels on x[0]/x[2].
    B, Cin, Cout = 2, 16, 8
    H0, W0 = 24, 24
    H, W = 16, 16
    H2, W2 = 7, 7

    x0 = jax.random.normal(keys[0], (B, Cout, H0, W0), dtype=jnp.float32)
    x1 = jax.random.normal(keys[1], (B, Cin, H, W), dtype=jnp.float32)
    x2 = jax.random.normal(keys[2], (B, Cout, H2, W2), dtype=jnp.float32)

    # SimConv cv1: Conv2d(Cin->Cout, 1, bias=False) + BatchNorm2d + ReLU
    cv1_w = 0.2 * np.asarray(jax.random.normal(keys[3], (Cout, Cin), dtype=jnp.float32))
    cv1_g = 1.0 + 0.1 * np.asarray(jax.random.normal(keys[4], (Cout,), dtype=jnp.float32))
    cv1_b = 0.1 * np.asarray(jax.random.normal(keys[5], (Cout,), dtype=jnp.float32))
    cv1_m = 0.1 * np.asarray(jax.random.normal(keys[6], (Cout,), dtype=jnp.float32))
    cv1_v = 0.5 + np.abs(np.asarray(jax.random.normal(keys[7], (Cout,), dtype=jnp.float32)))

    # SimConv cv_fuse: Conv2d(3*Cout->Cout, 1, bias=False) + BatchNorm2d + ReLU
    cvf_w = 0.2 * np.asarray(jax.random.normal(keys[8], (Cout, 3 * Cout), dtype=jnp.float32))
    cvf_g = 1.0 + 0.1 * np.asarray(jax.random.normal(keys[9], (Cout,), dtype=jnp.float32))
    cvf_b = 0.1 * np.asarray(jax.random.normal(keys[10], (Cout,), dtype=jnp.float32))
    cvf_m = 0.1 * np.asarray(jax.random.normal(keys[11], (Cout,), dtype=jnp.float32))
    cvf_v = 0.5 + np.abs(np.asarray(jax.random.normal(keys[12], (Cout,), dtype=jnp.float32)))

    # Fold BN into the 1x1 convs; split cv_fuse's weight by concat channel group.
    w1, b1 = _fold_bn(cv1_w, cv1_g, cv1_b, cv1_m, cv1_v)
    wf, bf = _fold_bn(cvf_w, cvf_g, cvf_b, cvf_m, cvf_v)
    wfa, wfb, wfc = wf[:, :Cout], wf[:, Cout:2 * Cout], wf[:, 2 * Cout:]

    out = l_laf(x0, x1, x2,
                jnp.asarray(w1), jnp.asarray(b1),
                jnp.asarray(np.ascontiguousarray(wfa)),
                jnp.asarray(np.ascontiguousarray(wfb)),
                jnp.asarray(np.ascontiguousarray(wfc)),
                jnp.asarray(bf))
    out = jax.block_until_ready(out)

    ref = _ref_l_laf(np.asarray(x0), np.asarray(x1), np.asarray(x2),
                     (cv1_w, cv1_g, cv1_b, cv1_m, cv1_v),
                     (cvf_w, cvf_g, cvf_b, cvf_m, cvf_v))

    assert out.shape == (B, Cout, H, W)
    err = float(np.max(np.abs(np.asarray(out) - ref)))
    assert np.allclose(np.asarray(out), ref, atol=1e-3, rtol=1e-3), err

    print("KERNEL_OK")
</pallas_src>

<mosaic_0001>
module attributes {stable_mosaic.version = 11 : i64} {
  func.func @_l_laf_kernel(%arg0: i32, %arg1: memref<576x256xf32, #tpu.memory_space<vmem>>, %arg2: memref<49x256xf32, #tpu.memory_space<vmem>>, %arg3: memref<8x16xf32, #tpu.memory_space<vmem>>, %arg4: memref<8x1xf32, #tpu.memory_space<vmem>>, %arg5: memref<8x8xf32, #tpu.memory_space<vmem>>, %arg6: memref<8x8xf32, #tpu.memory_space<vmem>>, %arg7: memref<8x8xf32, #tpu.memory_space<vmem>>, %arg8: memref<8x1xf32, #tpu.memory_space<vmem>>, %arg9: memref<1x8x576xf32, #tpu.memory_space<vmem>>, %arg10: memref<1x16x256xf32, #tpu.memory_space<vmem>>, %arg11: memref<1x8x49xf32, #tpu.memory_space<vmem>>, %arg12: memref<1x8x256xf32, #tpu.memory_space<vmem>>) attributes {dimension_semantics = [#tpu.dimension_semantics<parallel>], iteration_bounds = array<i64: 2>, scalar_prefetch = 0 : i64, scratch_operands = 0 : i64, tpu.core_type = #tpu.core_type<tc>, window_params = [{pipeline_mode = #tpu.pipeline_mode<synchronous>, transform_indices = @transform_0, window_bounds = array<i64: 576, 256>}, {pipeline_mode = #tpu.pipeline_mode<synchronous>, transform_indices = @transform_1, window_bounds = array<i64: 49, 256>}, {pipeline_mode = #tpu.pipeline_mode<synchronous>, transform_indices = @transform_2, window_bounds = array<i64: 8, 16>}, {pipeline_mode = #tpu.pipeline_mode<synchronous>, transform_indices = @transform_3, window_bounds = array<i64: 8, 1>}, {pipeline_mode = #tpu.pipeline_mode<synchronous>, transform_indices = @transform_4, window_bounds = array<i64: 8, 8>}, {pipeline_mode = #tpu.pipeline_mode<synchronous>, transform_indices = @transform_5, window_bounds = array<i64: 8, 8>}, {pipeline_mode = #tpu.pipeline_mode<synchronous>, transform_indices = @transform_6, window_bounds = array<i64: 8, 8>}, {pipeline_mode = #tpu.pipeline_mode<synchronous>, transform_indices = @transform_7, window_bounds = array<i64: 8, 1>}, {transform_indices = @transform_8, window_bounds = array<i64: 1, 8, 576>}, {transform_indices = @transform_9, window_bounds = array<i64: 1, 16, 256>}, {transform_indices = @transform_10, window_bounds = array<i64: 1, 8, 49>}, {transform_indices = @transform_11, window_bounds = array<i64: 1, 8, 256>}]} {
    %c0 = arith.constant 0 : index
    %c0_0 = arith.constant 0 : index
    %c0_1 = arith.constant 0 : index
    %0 = vector.load %arg9[%c0, %c0_0, %c0_1] : memref<1x8x576xf32, #tpu.memory_space<vmem>>, vector<1x8x576xf32>
    %1 = vector.shape_cast %0 : vector<1x8x576xf32> to vector<8x576xf32>
    %c0_2 = arith.constant 0 : index
    %c0_3 = arith.constant 0 : index
    %2 = vector.load %arg1[%c0_2, %c0_3] : memref<576x256xf32, #tpu.memory_space<vmem>>, vector<576x256xf32>
    %cst = arith.constant dense<0.000000e+00> : vector<8x256xf32>
    %3 = tpu.matmul %1, %2, %cst {dimension_numbers = #tpu.dot_dimension_numbers<[1], [0], [0], [1], [0, 0, 1, 1], [], []>} : vector<8x576xf32>, vector<576x256xf32>, vector<8x256xf32> -> vector<8x256xf32>
    %c0_4 = arith.constant 0 : index
    %c0_5 = arith.constant 0 : index
    %c0_6 = arith.constant 0 : index
    %4 = vector.load %arg11[%c0_4, %c0_5, %c0_6] : memref<1x8x49xf32, #tpu.memory_space<vmem>>, vector<1x8x49xf32>
    %5 = vector.shape_cast %4 : vector<1x8x49xf32> to vector<8x49xf32>
    %c0_7 = arith.constant 0 : index
    %c0_8 = arith.constant 0 : index
    %6 = vector.load %arg2[%c0_7, %c0_8] : memref<49x256xf32, #tpu.memory_space<vmem>>, vector<49x256xf32>
    %cst_9 = arith.constant dense<0.000000e+00> : vector<8x256xf32>
    %7 = tpu.matmul %5, %6, %cst_9 {dimension_numbers = #tpu.dot_dimension_numbers<[1], [0], [0], [1], [0, 0, 1, 1], [], []>} : vector<8x49xf32>, vector<49x256xf32>, vector<8x256xf32> -> vector<8x256xf32>
    %c0_10 = arith.constant 0 : index
    %c0_11 = arith.constant 0 : index
    %8 = vector.load %arg3[%c0_10, %c0_11] : memref<8x16xf32, #tpu.memory_space<vmem>>, vector<8x16xf32>
    %c0_12 = arith.constant 0 : index
    %c0_13 = arith.constant 0 : index
    %c0_14 = arith.constant 0 : index
    %9 = vector.load %arg10[%c0_12, %c0_13, %c0_14] : memref<1x16x256xf32, #tpu.memory_space<vmem>>, vector<1x16x256xf32>
    %10 = vector.shape_cast %9 : vector<1x16x256xf32> to vector<16x256xf32>
    %cst_15 = arith.constant dense<0.000000e+00> : vector<8x256xf32>
    %11 = tpu.matmul %8, %10, %cst_15 {dimension_numbers = #tpu.dot_dimension_numbers<[1], [0], [0], [1], [0, 0, 1, 1], [], []>} : vector<8x16xf32>, vector<16x256xf32>, vector<8x256xf32> -> vector<8x256xf32>
    %c0_16 = arith.constant 0 : index
    %c0_17 = arith.constant 0 : index
    %12 = vector.load %arg4[%c0_16, %c0_17] : memref<8x1xf32, #tpu.memory_space<vmem>>, vector<8x1xf32>
    %13 = vector.broadcast %12 : vector<8x1xf32> to vector<8x256xf32>
    %14 = arith.addf %11, %13 : vector<8x256xf32>
    %cst_18 = arith.constant 0.000000e+00 : f32
    %15 = vector.broadcast %cst_18 : f32 to vector<8x256xf32>
    %16 = arith.maximumf %14, %15 : vector<8x256xf32>
    %c0_19 = arith.constant 0 : index
    %c0_20 = arith.constant 0 : index
    %17 = vector.load %arg5[%c0_19, %c0_20] : memref<8x8xf32, #tpu.memory_space<vmem>>, vector<8x8xf32>
    %cst_21 = arith.constant dense<0.000000e+00> : vector<8x256xf32>
    %18 = tpu.matmul %17, %3, %cst_21 {dimension_numbers = #tpu.dot_dimension_numbers<[1], [0], [0], [1], [0, 0, 1, 1], [], []>} : vector<8x8xf32>, vector<8x256xf32>, vector<8x256xf32> -> vector<8x256xf32>
    %c0_22 = arith.constant 0 : index
    %c0_23 = arith.constant 0 : index
    %19 = vector.load %arg6[%c0_22, %c0_23] : memref<8x8xf32, #tpu.memory_space<vmem>>, vector<8x8xf32>
    %cst_24 = arith.constant dense<0.000000e+00> : vector<8x256xf32>
    %20 = tpu.matmul %19, %16, %cst_24 {dimension_numbers = #tpu.dot_dimension_numbers<[1], [0], [0], [1], [0, 0, 1, 1], [], []>} : vector<8x8xf32>, vector<8x256xf32>, vector<8x256xf32> -> vector<8x256xf32>
    %21 = arith.addf %18, %20 : vector<8x256xf32>
    %c0_25 = arith.constant 0 : index
    %c0_26 = arith.constant 0 : index
    %22 = vector.load %arg7[%c0_25, %c0_26] : memref<8x8xf32, #tpu.memory_space<vmem>>, vector<8x8xf32>
    %cst_27 = arith.constant dense<0.000000e+00> : vector<8x256xf32>
    %23 = tpu.matmul %22, %7, %cst_27 {dimension_numbers = #tpu.dot_dimension_numbers<[1], [0], [0], [1], [0, 0, 1, 1], [], []>} : vector<8x8xf32>, vector<8x256xf32>, vector<8x256xf32> -> vector<8x256xf32>
    %24 = arith.addf %21, %23 : vector<8x256xf32>
    %c0_28 = arith.constant 0 : index
    %c0_29 = arith.constant 0 : index
    %25 = vector.load %arg8[%c0_28, %c0_29] : memref<8x1xf32, #tpu.memory_space<vmem>>, vector<8x1xf32>
    %26 = vector.broadcast %25 : vector<8x1xf32> to vector<8x256xf32>
    %27 = arith.addf %24, %26 : vector<8x256xf32>
    %cst_30 = arith.constant 0.000000e+00 : f32
    %28 = vector.broadcast %cst_30 : f32 to vector<8x256xf32>
    %29 = arith.maximumf %27, %28 : vector<8x256xf32>
    %c0_31 = arith.constant 0 : index
    %c0_32 = arith.constant 0 : index
    %c0_33 = arith.constant 0 : index
    %30 = vector.load %arg12[%c0_31, %c0_32, %c0_33] : memref<1x8x256xf32, #tpu.memory_space<vmem>>, vector<1x8x256xf32>
    %31 = vector.shape_cast %30 : vector<1x8x256xf32> to vector<8x256xf32>
    %32 = vector.shape_cast %29 : vector<8x256xf32> to vector<1x8x256xf32>
    tpu.vector_store %arg12[%c0_31, %c0_32, %c0_33], %32 {strides = array<i32>} : memref<1x8x256xf32, #tpu.memory_space<vmem>>, vector<1x8x256xf32>,
    return
  }
  func.func @transform_0(%arg0: i32) -> (i32, i32) {
    %c0_i32 = arith.constant 0 : i32
    %c0_i32_0 = arith.constant 0 : i32
    %c0_i32_1 = arith.constant 0 : i32
    return %c0_i32, %c0_i32_0 : i32, i32
  }
  func.func @transform_1(%arg0: i32) -> (i32, i32) {
    %c0_i32 = arith.constant 0 : i32
    %c0_i32_0 = arith.constant 0 : i32
    %c0_i32_1 = arith.constant 0 : i32
    return %c0_i32, %c0_i32_0 : i32, i32
  }
  func.func @transform_2(%arg0: i32) -> (i32, i32) {
    %c0_i32 = arith.constant 0 : i32
    %c0_i32_0 = arith.constant 0 : i32
    %c0_i32_1 = arith.constant 0 : i32
    return %c0_i32, %c0_i32_0 : i32, i32
  }
  func.func @transform_3(%arg0: i32) -> (i32, i32) {
    %c0_i32 = arith.constant 0 : i32
    %c0_i32_0 = arith.constant 0 : i32
    %c0_i32_1 = arith.constant 0 : i32
    return %c0_i32, %c0_i32_0 : i32, i32
  }
  func.func @transform_4(%arg0: i32) -> (i32, i32) {
    %c0_i32 = arith.constant 0 : i32
    %c0_i32_0 = arith.constant 0 : i32
    %c0_i32_1 = arith.constant 0 : i32
    return %c0_i32, %c0_i32_0 : i32, i32
  }
  func.func @transform_5(%arg0: i32) -> (i32, i32) {
    %c0_i32 = arith.constant 0 : i32
    %c0_i32_0 = arith.constant 0 : i32
    %c0_i32_1 = arith.constant 0 : i32
    return %c0_i32, %c0_i32_0 : i32, i32
  }
  func.func @transform_6(%arg0: i32) -> (i32, i32) {
    %c0_i32 = arith.constant 0 : i32
    %c0_i32_0 = arith.constant 0 : i32
    %c0_i32_1 = arith.constant 0 : i32
    return %c0_i32, %c0_i32_0 : i32, i32
  }
  func.func @transform_7(%arg0: i32) -> (i32, i32) {
    %c0_i32 = arith.constant 0 : i32
    %c0_i32_0 = arith.constant 0 : i32
    %c0_i32_1 = arith.constant 0 : i32
    return %c0_i32, %c0_i32_0 : i32, i32
  }
  func.func @transform_8(%arg0: i32) -> (i32, i32, i32) {
    %c0_i32 = arith.constant 0 : i32
    %c0_i32_0 = arith.constant 0 : i32
    %c0_i32_1 = arith.constant 0 : i32
    return %arg0, %c0_i32, %c0_i32_0 : i32, i32, i32
  }
  func.func @transform_9(%arg0: i32) -> (i32, i32, i32) {
    %c0_i32 = arith.constant 0 : i32
    %c0_i32_0 = arith.constant 0 : i32
    %c0_i32_1 = arith.constant 0 : i32
    return %arg0, %c0_i32, %c0_i32_0 : i32, i32, i32
  }
  func.func @transform_10(%arg0: i32) -> (i32, i32, i32) {
    %c0_i32 = arith.constant 0 : i32
    %c0_i32_0 = arith.constant 0 : i32
    %c0_i32_1 = arith.constant 0 : i32
    return %arg0, %c0_i32, %c0_i32_0 : i32, i32, i32
  }
  func.func @transform_11(%arg0: i32) -> (i32, i32, i32) {
    %c0_i32 = arith.constant 0 : i32
    %c0_i32_0 = arith.constant 0 : i32
    %c0_i32_1 = arith.constant 0 : i32
    return %arg0, %c0_i32, %c0_i32_0 : i32, i32, i32
  }
}

</mosaic_0001>

<bundles_post_ra>
// kernel: tpu_custom_call.1
= control target key start
LH: loop header
LB: loop body
LE: loop exit
PB: predicated region body
PF: predicated region fallthrough
CT: control target
= control target key end

     0   :  { %s2170_s0 = inlined_call_operand.hbm [shape: f32[576,256], index: 0, kind: input, shape index: {}]   ;;  %s2171_s1 = inlined_call_operand.hbm [shape: f32[49,256], index: 1, kind: input, shape index: {}]   ;;  %s2172_s2 = inlined_call_operand.hbm [shape: f32[8,16], index: 2, kind: input, shape index: {}]   ;;  %s2173_s3 = inlined_call_operand.vmem [shape: f32[8,1], index: 3, kind: input, shape index: {}]   ;;  %s2174_s4 = inlined_call_operand.hbm [shape: f32[8,8], index: 4, kind: input, shape index: {}]   ;;  %s2175_s5 = inlined_call_operand.hbm [shape: f32[8,8], index: 5, kind: input, shape index: {}]   ;;  %s2176_s6 = inlined_call_operand.hbm [shape: f32[8,8], index: 6, kind: input, shape index: {}]   ;;  %s2177_s7 = inlined_call_operand.vmem [shape: f32[8,1], index: 7, kind: input, shape index: {}]   ;;  %s2178_s8 = inlined_call_operand.hbm [shape: f32[2,8,576], index: 8, kind: input, shape index: {}]   ;;  %s2179_s9 = inlined_call_operand.hbm [shape: f32[2,16,256], index: 9, kind: input, shape index: {}]   ;;  %s2180_s10 = inlined_call_operand.vmem [shape: f32[2,8,49], index: 10, kind: input, shape index: {}]   ;;  %s2181_s11 = inlined_call_operand.hbm [shape: f32[2,8,256], index: 11, kind: output, shape index: {}]  }
   0x1   :  { %2191 = sst [smem:[#allocation28_spill]] %s2170_s0 }
   0x2   :  { %2192 = sst [smem:[#allocation29_spill]] %s2171_s1 }
   0x3   :  { %2193 = sst [smem:[#allocation30_spill]] %s2172_s2 }
   0x4   :  { %2194 = sst [smem:[#allocation31_spill]] %s2174_s4 }
   0x5   :  { %16 = vsyncpa [#allocation3], 0 }
   0x6   :  { %17 = vsyncpa [#allocation6], 0 }
   0x7   :  { %18 = vsyncpa [#allocation9], 0 }
   0x8   :  { %19 = vsyncpa [#allocation12], 0 }
   0x9   :  { %20 = vsyncpa [#allocation4], 0 }
   0xa   :  { %22 = vsyncpa [#allocation4 + $0x1], 0  ;;  %s1905_s17 = smov 0   ;;  %s1907_s18 = smov 0  }
   0xb   :  { %s1909_s19 = smov 0   ;;  %s1911_s20 = smov 0  }
   0xc LB: > { %2195 = sst [smem:[#allocation22_spill]] %s1822_s17  ;;  %s1929_s24 = sadd.s32 4294967295, %s1834_s20   ;;  %s1834_s20 = sphi %s1911_s20, %s2226_s20   ;;  %s1830_s19 = sphi %s1909_s19, %s2228_s19   ;;  %s1826_s18 = sphi %s1907_s18, %s2230_s18   ;;  %s1822_s17 = sphi %s1905_s17, %s2229_s17  }
   0xd   : > { %2196 = sst [smem:[#allocation23_spill]] %s1830_s19  ;;  %p1350_p0 = scmp.ge.s32.totalorder %s1834_s20, 1 }
   0xe   : > { %s2197_s0 = sld [smem:[#allocation28_spill]]  ;;  %p2189_p1 = scmp.eq.s32.totalorder %s1929_s24, 0 }
   0xf   : > { %p305_p2 = scmp.lt.s32.totalorder %s1834_s20, 3  ;;  %s1836_s26 = smov [#allocation2]  }
  0x10   : > { %s318_s27 = sshll.u32 %s1836_s26, 4  ;;  %s2199_s1 = sld [smem:[#allocation29_spill]]  ;;  %s319_s27 = int_to_ptr.vmem [resolvable:$true] %s318_s27 }
  0x11   : > { %p1934_p3 = pnand %p1350_p0, %p305_p2  ;;  %s2201_s4 = sld [smem:[#allocation31_spill]] }
  0x12   : > { %s1837_s16 = smov [#allocation5]   ;;  %s2182_s22 = smov 256  }
  0x13   : > { %p1426_p4 = pneg %p1934_p3  ;;  %s332_s21 = sshll.u32 %s1837_s16, 4  ;;  %s333_s21 = int_to_ptr.vmem [resolvable:$true] %s332_s21 }
  0x14   : > { %s316_s23 = sshll.u32 %s2197_s0, 4  ;;  %s2183_s26 = smov 16   ;;  %s317_s23 = int_to_ptr.hbm [resolvable:$true] %s316_s23 }
  0x15   : > { %p1946_p6 = pnand %p1426_p4, %p2189_p1  ;;  %s1840_s28 = smov [#allocation8]  }
  0x16   : > { %s330_s30 = sshll.u32 %s2199_s1, 4  ;;  %s362_s29 = sshll.u32 %s1840_s28, 4  ;;  %s331_s30 = int_to_ptr.hbm [resolvable:$true] %s330_s30  ;;  %s363_s29 = int_to_ptr.vmem [resolvable:$true] %s362_s29 }
  0x17   : > { %s360_s15 = sshll.u32 %s2201_s4, 4  ;;  %s1349_s13 = sadd.s32 4294967294, %s1834_s20   ;;  %s361_s15 = int_to_ptr.hbm [resolvable:$true] %s360_s15 }
  0x18   : > { %1429 = dma.hbm_to_vmem [thread:$0]  (!%p1946_p6), %s317_s23, 18432, %s319_s27, [#allocation3], %s2182_s22, %s2182_s22, %s2183_s26  }
  0x19   : > { %1432 = dma.hbm_to_vmem [thread:$0]  (!%p1946_p6), %s331_s30, 1792, %s333_s21, [#allocation6], %s2182_s22, %s2182_s22, %s2183_s26  }
  0x1a   : > { %1438 = dma.hbm_to_vmem [thread:$0]  (!%p1946_p6), %s361_s15, 128, %s363_s29, [#allocation9]  }
  0x1b   : > { %s1967_s14 = sadd.s32 1, %s1834_s20   ;;  %s203_s23 = sadd.s32 1, %s1830_s19 }
  0x1c   : > { %2202 = sst [smem:[#allocation24_spill]] %s1967_s14  ;;  %s200_s27 = ssub.s32 %s1834_s20, %s1967_s14 }
  0x1d   : > { %p210_p7 = scmp.ne.s32.totalorder %s1830_s19, %s1826_s18  ;;  %p201_p8 = scmp.eq.s32.totalorder %s200_s27, 0 }
  0x1e   : > { %p211_p9 = scmp.eq.s32.totalorder %s1834_s20, 0  ;;  %p216_p10 = scmp.ne.s32.totalorder %s1826_s18, %s1822_s17 }
  0x1f   : > { %p292_p11 = scmp.eq.s32.totalorder %s1929_s24, 1  ;;  %p298_p2 = scmp.eq.s32.totalorder %s1349_s13, 1 }
  0x20   : > { %s1979_s30 = scalar_select %p201_p8, %s1830_s19, %s203_s23  }
  0x21   : > { %p212_p12 = por %p211_p9, %p210_p7  ;;  %p1983_p13 = por %p2189_p1, %p216_p10 }
  0x22   : > { %2203 = sst [smem:[#allocation25_spill]] %s1979_s30  ;;  %p1987_p0 = por %p292_p11, %p210_p7 }
  0x23   : > { %p1462_p4 = scmp.lt.s32.totalorder %s1834_s20, 2  ;;  %s400_s21 = sand.u32 1, %s1834_s20  }
  0x24   : > { %p1993_p5 = por %p298_p2, %p216_p10  ;;  %s402_s29 = sand.u32 1, %s1830_s19  }
  0x25   : > { %s1394_s23 = smul.u32 40, %s1834_s20  ;;  %p1999_p8 = pnand %p1462_p4, %p212_p12 }
  0x26   : > { %s2206_s28 = scalar_select %p1993_p5, 1, 0 }
  0x27   : > { %s1393_s27 = smul.u32 40, %s402_s29  ;;  %s409_s1 = scalar_lea.hbm %s2178_s8, %s1394_s23 }
  0x28   : > { %2207 = sst [smem:[#allocation26_spill]] %s2206_s28  ;;  %s1359_s13 = sshll.u32 %s402_s29, 5 }
  0x29   : > { %s411_s4 = sshll.u32 %s409_s1, 4  ;;  %s404_s30 = scalar_lea.vmem [#allocation13], %s1393_s27  ;;  %s412_s4 = int_to_ptr.hbm [resolvable:$true] %s411_s4 }
  0x2a   : > { %s413_s14 = sshll.u32 %s404_s30, 4  ;;  %s2006_s28 = scalar_lea.sflag [#allocation3], %s400_s21  ;;  %s414_s14 = int_to_ptr.vmem [resolvable:$true] %s413_s14 }
  0x2b   : > { %s1602_s19 = sshra.s32 %s412_s4, 4  ;;  %p1606_p9 = pneg %p1999_p8  ;;  %s1603_s19 = int_to_ptr.hbm [resolvable:$true] %s1602_s19 }
  0x2c   : > { %s1604_s17 = scalar_lea.hbm %s1603_s19, 40  ;;  %s1609_s1 = scalar_lea.hbm %s2178_s8, 80 }
  0x2d   : > { %p1605_p7 = scmp.ne.s32.totalorder %s1603_s19, %s1604_s17  ;;  %p1610_p12 = scmp.lt.s32.totalorder %s1603_s19, %s2178_s8 }
  0x2e   : > { %p1611_p2 = scmp.lt.s32.totalorder %s1609_s1, %s1604_s17 }
  0x2f   : > { %p1607_p10 = pnand %p1606_p9, %p1605_p7 }
  0x30   : > { %p1612_p4 = por %p1611_p2, %p1610_p12 }
  0x31   : > { %p1608_p11 = pneg %p1607_p10 }
  0x33   : > { %p1613_p1 = pnand %p1612_p4, %p1608_p11 }
  0x35   : > { %1616 = shalt.err (!%p1613_p1)
}
  0x36   : > { %1448 = dma.hbm_to_vmem [thread:$0]  (!%p1999_p8), %s412_s4, 640, %s414_s14, %s2006_s28  }
  0x37   : > { %s2209_s2 = sld [smem:[#allocation30_spill]]  ;;  %s424_s0 = scalar_lea.vmem [#allocation14], %s1359_s13 }
  0x38   : > { %s2025_s26 = sshll.u32 %s424_s0, 4  ;;  %s1841_s17 = smov [#allocation7]  }
  0x39   : > { %2210 = sst [smem:[#allocation27_spill]] %s2025_s26  ;;  %s347_s19 = sshll.u32 %s1841_s17, 4  ;;  %s348_s19 = int_to_ptr.vmem [resolvable:$true] %s347_s19 }
  0x3a   : > { %s372_s23 = sshll.u32 %s2175_s5, 4  ;;  %s384_s13 = sshll.u32 %s2176_s6, 4  ;;  %s373_s23 = int_to_ptr.hbm [resolvable:$true] %s372_s23  ;;  %s385_s13 = int_to_ptr.hbm [resolvable:$true] %s384_s13 }
  0x3b   : > { %s1842_s30 = smov [#allocation10]   ;;  %s1843_s0 = smov [#allocation11]  }
  0x3c   : > { %s374_s21 = sshll.u32 %s1842_s30, 4  ;;  %s386_s17 = sshll.u32 %s1843_s0, 4  ;;  %s375_s21 = int_to_ptr.vmem [resolvable:$true] %s374_s21  ;;  %s387_s17 = int_to_ptr.vmem [resolvable:$true] %s386_s17 }
  0x3d   : > { %s345_s27 = sshll.u32 %s2209_s2, 4  ;;  %s1391_s1 = sshll.u32 %s1834_s20, 5  ;;  %s346_s27 = int_to_ptr.hbm [resolvable:$true] %s345_s27 }
  0x3e   : > { %1435 = dma.hbm_to_vmem [thread:$0]  (!%p1946_p6), %s346_s27, 128, %s348_s19, [#allocation6]  }
  0x3f   : > { %1441 = dma.hbm_to_vmem [thread:$0]  (!%p1946_p6), %s373_s23, 128, %s375_s21, [#allocation9]  }
  0x40   : > { %s429_s2 = scalar_lea.hbm %s2179_s9, %s1391_s1  ;;  %s1729_s30 = scalar_lea.hbm %s2179_s9, 64 }
  0x41   : > { %1444 = dma.hbm_to_vmem [thread:$0]  (!%p1946_p6), %s385_s13, 128, %s387_s17, [#allocation12]  }
  0x42   : > { %s430_s27 = sshll.u32 %s429_s2, 4  ;;  %s431_s27 = int_to_ptr.hbm [resolvable:$true] %s430_s27 }
  0x43   : > { %s1722_s19 = sshra.s32 %s431_s27, 4  ;;  %s1723_s19 = int_to_ptr.hbm [resolvable:$true] %s1722_s19 }
  0x44   : > { %s1724_s4 = scalar_lea.hbm %s1723_s19, 32  ;;  %p1730_p11 = scmp.lt.s32.totalorder %s1723_s19, %s2179_s9 }
  0x45   : > { %p1725_p1 = scmp.ne.s32.totalorder %s1723_s19, %s1724_s4  ;;  %p1731_p12 = scmp.lt.s32.totalorder %s1729_s30, %s1724_s4 }
  0x47   : > { %p1727_p7 = pnand %p1725_p1, %p1606_p9  ;;  %p1732_p6 = por %p1731_p12, %p1730_p11 }
  0x49   : > { %p1728_p10 = pneg %p1727_p7 }
  0x4b   : > { %p1733_p2 = pnand %p1732_p6, %p1728_p10 }
  0x4d   : > { %1736 = shalt.err (!%p1733_p2)
}
  0x4e   : > { %s2211_s2 = smov 16   ;;  %s2212_s12 = smov 256  }
  0x4f   : > { %s2213_s26 = sld [smem:[#allocation27_spill]]  ;;  %p2215_p9 = scmp.eq.s32.totalorder (!%p1934_p3), %s1929_s24, 0 }
  0x52   : > { %451 = sbr.rel (%p1934_p3) target bundleno = 475 (0x1db), region = 64 }
  0x55   : > { %s2214_s13 = int_to_ptr.vmem [resolvable:$true] %s2213_s26 }
  0x56   : > { %1451 = dma.hbm_to_vmem [thread:$0]  (!%p1999_p8), %s431_s27, 512, %s2214_s13, %s2006_s28, %s2212_s12, %s2212_s12, %s2211_s2  }
  0x57   : > { %1797 = dma.done.wait (%p2215_p9), [#allocation3], 18432   ;;  %p2216_p4 = pmov %p2215_p9 }
  0x59   : > { %1799 = vsyncadd (%p2216_p4), [#allocation3], 4294948864  ;;  %p2217_p1 = pmov %p2216_p4 }
  0x5b   : > { %1801 = dma.done.wait (%p2217_p1), [#allocation6], 1920   ;;  %p2218_p7 = pmov %p2217_p1 }
  0x5c   : > { %p2219_p10 = pmov %p2217_p1 }
  0x5d   : > { %1803 = vsyncadd (%p2218_p7), [#allocation6], 4294965376 }
  0x5e   : > { %1805 = dma.done.wait (%p2219_p10), [#allocation9], 256   ;;  %p2220_p8 = pmov %p2217_p1 }
  0x5f   : > { %p2221_p3 = pmov %p2217_p1 }
  0x60   : > { %1807 = vsyncadd (%p2220_p8), [#allocation9], 4294967040 }
  0x61   : > { %1809 = dma.done.wait (%p2221_p3), [#allocation12], 128   ;;  %p2222_p11 = pmov %p2217_p1 }
  0x62   : > { %s483_s25 = sand.u32 1, %s1929_s24   ;;  %s2081_s22 = sand.u32 1, %s1826_s18  }
  0x63   : > { %1811 = vsyncadd (%p2222_p11), [#allocation12], 4294967168  ;;  %s1395_s28 = smul.u32 40, %s2081_s22  ;;  %s484_s17 = scalar_lea.sflag [#allocation3], %s483_s25 }
  0x65   : > { %s2084_s1 = scalar_lea.vmem [#allocation13], %s1395_s28 }
  0x66   : > { %1813 = dma.done.wait (%p1983_p13), %s484_s17, 1152  }
  0x67   : > { %1815 = vsyncadd (%p1983_p13), %s484_s17, 4294966144  ;;  %v585_v0 = vld [vmem:[#allocation2 + $0xf0] sm:$0xff]  ;;  %v583_v3 = vld [vmem:[#allocation2 + $0xe0] sm:$0xff]  ;;  %vm922_vm0 = vcmask 1040384   ;;  %vm699_vm1 = vcmask 523264   ;;  %p546_p13 = scmp.lt.s32.totalorder %s1929_s24, 1 }
  0x68   : > { %v649_v1 = vld [vmem:[#allocation2 + $0x2f0] sm:$0xff]  ;;  %703 = vmatpush.msra.mxu0 %v585_v0  ;;  %v647_v5 = vld [vmem:[#allocation2 + $0x2e0] sm:$0xff]  ;;  %v618_v0 = vld [vmem:[#allocation2 + $0x1f8] sm:$0xff]  ;;  %s1369_s23 = sshll.u32 %s2081_s22, 5  ;;  %vm918_vm2 = vcmask 400384   ;;  %vm980_vm3 = vcmask 130048  }
  0x69   : > { %v681_v2 = vld [vmem:[#allocation2 + $0x3f0] sm:$0xff]  ;;  %743 = vmatpush.msra.mxu2 %v649_v1  ;;  %v679_v6 = vld [vmem:[#allocation2 + $0x3e0] sm:$0xff]  ;;  %v650_v1 = vld [vmem:[#allocation2 + $0x2f8] sm:$0xff]  ;;  %s2112_s15 = scalar_select %p546_p13, %s1929_s24, 1  ;;  %vm1028_vm4 = vcmask 64512  }
  0x6a   : > { %v617_v4 = vld [vmem:[#allocation2 + $0x1f0] sm:$0xff]  ;;  %763 = vmatpush.msra.mxu3 %v681_v2  ;;  %v615_v8 = vld [vmem:[#allocation2 + $0x1e0] sm:$0xff]  ;;  %704 = vmatpush.msra.mxu0 %v583_v3  ;;  %s497_s14 = scalar_lea.vmem [#allocation14], %s1369_s23  ;;  %s1370_s12 = sshll.u32 %s2081_s22, 4 }
  0x6b   : > { %723 = vmatpush.msra.mxu1 %v617_v4  ;;  %v581_v7 = vld [vmem:[#allocation2 + $0xd0] sm:$0xff]  ;;  %744 = vmatpush.msra.mxu2 %v647_v5  ;;  %v579_v11 = vld [vmem:[#allocation2 + $0xc0] sm:$0xff]  ;;  %v586_v4 = vld [vmem:[#allocation2 + $0xf8] sm:$0xff]  ;;  %s1371_s29 = sshll.u32 %s2112_s15, 3  ;;  %s1392_s26 = sshll.u32 %s1929_s24, 4 }
  0x6c   : > { %v645_v9 = vld [vmem:[#allocation2 + $0x2d0] sm:$0xff]  ;;  %764 = vmatpush.msra.mxu3 %v679_v6  ;;  %v643_v13 = vld [vmem:[#allocation2 + $0x2c0] sm:$0xff]  ;;  %705 = vmatpush.msra.mxu0 %v581_v7  ;;  %v616_v5 = vld [vmem:[#allocation2 + $0x1e8] sm:$0xff]  ;;  %s549_s4 = scalar_lea.vmem %s2180_s10, %s1371_s29  ;;  %s1185_s28 = scalar_lea.hbm %s2181_s11, %s1392_s26 }
  0x6d   : > { %v677_v10 = vld [vmem:[#allocation2 + $0x3d0] sm:$0xff]  ;;  %724 = vmatpush.msra.mxu1 %v615_v8  ;;  %745 = vmatpush.msra.mxu2 %v645_v9  ;;  %v675_v14 = vld [vmem:[#allocation2 + $0x3c0] sm:$0xff]  ;;  %v648_v6 = vld [vmem:[#allocation2 + $0x2e8] sm:$0xff]  ;;  %s545_s17 = scalar_lea.vmem [#allocation15], %s1370_s12  ;;  %s1189_s15 = sshll.u32 %s1185_s28, 4  ;;  %s1190_s15 = int_to_ptr.hbm [resolvable:$true] %s1189_s15 }
  0x6e   : > { %v613_v12 = vld [vmem:[#allocation2 + $0x1d0] sm:$0xff]  ;;  %v611_v15 = vld [vmem:[#allocation2 + $0x1c0] sm:$0xff]  ;;  %765 = vmatpush.msra.mxu3 %v677_v10  ;;  %706 = vmatpush.msra.mxu0 %v579_v11  ;;  %v584_v8 = vld [vmem:[#allocation2 + $0xe8] sm:$0xff]  ;;  %s1174_s24 = scalar_lea.sflag [#allocation4], %s2081_s22  ;;  %s1766_s29 = sshra.s32 %s1190_s15, 4  ;;  %s1767_s29 = int_to_ptr.hbm [resolvable:$true] %s1766_s29 }
  0x6f   : > { %725 = vmatpush.msra.mxu1 %v613_v12  ;;  %v577_v16 = vld [vmem:[#allocation2 + $0xb0] sm:$0xff]  ;;  %746 = vmatpush.msra.mxu2 %v643_v13  ;;  %v575_v20 = vld [vmem:[#allocation2 + $0xa0] sm:$0xff]  ;;  %v614_v9 = vld [vmem:[#allocation2 + $0x1d8] sm:$0xff]  ;;  %s1768_s27 = scalar_lea.hbm %s1767_s29, 16  ;;  %s1772_s23 = scalar_lea.hbm %s2181_s11, 32 }
  0x70   : > { %v641_v17 = vld [vmem:[#allocation2 + $0x2b0] sm:$0xff]  ;;  %766 = vmatpush.msra.mxu3 %v675_v14  ;;  %v639_v21 = vld [vmem:[#allocation2 + $0x2a0] sm:$0xff]  ;;  %707 = vmatpush.msra.mxu0 %v577_v16  ;;  %v646_v10 = vld [vmem:[#allocation2 + $0x2d8] sm:$0xff]  ;;  %p1769_p12 = scmp.ne.s32.totalorder %s1767_s29, %s1768_s27  ;;  %p1773_p9 = scmp.lt.s32.totalorder %s1767_s29, %s2181_s11 }
  0x71   : > { %v673_v18 = vld [vmem:[#allocation2 + $0x3b0] sm:$0xff]  ;;  %726 = vmatpush.msra.mxu1 %v611_v15  ;;  %747 = vmatpush.msra.mxu2 %v641_v17  ;;  %v671_v22 = vld [vmem:[#allocation2 + $0x3a0] sm:$0xff]  ;;  %v582_v12 = vld [vmem:[#allocation2 + $0xd8] sm:$0xff]  ;;  %p1774_p4 = scmp.lt.s32.totalorder %s1772_s23, %s1768_s27 }
  0x72   : > { %v609_v19 = vld [vmem:[#allocation2 + $0x1b0] sm:$0xff]  ;;  %v607_v23 = vld [vmem:[#allocation2 + $0x1a0] sm:$0xff]  ;;  %767 = vmatpush.msra.mxu3 %v673_v18  ;;  %708 = vmatpush.msra.mxu0 %v575_v20  ;;  %v612_v13 = vld [vmem:[#allocation2 + $0x1c8] sm:$0xff]  ;;  %p1770_p6 = pnand %p1769_p12, %p1987_p0 }
  0x73   : > { %727 = vmatpush.msra.mxu1 %v609_v19  ;;  %v573_v24 = vld [vmem:[#allocation2 + $0x90] sm:$0xff]  ;;  %748 = vmatpush.msra.mxu2 %v639_v21  ;;  %v571_v28 = vld [vmem:[#allocation2 + $0x80] sm:$0xff]  ;;  %v644_v14 = vld [vmem:[#allocation2 + $0x2c8] sm:$0xff]  ;;  %p1775_p1 = por %p1774_p4, %p1773_p9 }
  0x74   : > { %v637_v25 = vld [vmem:[#allocation2 + $0x290] sm:$0xff]  ;;  %768 = vmatpush.msra.mxu3 %v671_v22  ;;  %v635_v29 = vld [vmem:[#allocation2 + $0x280] sm:$0xff]  ;;  %709 = vmatpush.msra.mxu0 %v573_v24  ;;  %v580_v16 = vld [vmem:[#allocation2 + $0xc8] sm:$0xff]  ;;  %p1771_p2 = pneg %p1770_p6 }
  0x75   : > { %v669_v26 = vld [vmem:[#allocation2 + $0x390] sm:$0xff]  ;;  %728 = vmatpush.msra.mxu1 %v607_v23  ;;  %749 = vmatpush.msra.mxu2 %v637_v25  ;;  %v667_v30 = vld [vmem:[#allocation2 + $0x380] sm:$0xff]  ;;  %v610_v17 = vld [vmem:[#allocation2 + $0x1b8] sm:$0xff] }
  0x76   : > { %v605_v27 = vld [vmem:[#allocation2 + $0x190] sm:$0xff]  ;;  %v603_v31 = vld [vmem:[#allocation2 + $0x180] sm:$0xff]  ;;  %769 = vmatpush.msra.mxu3 %v669_v26  ;;  %710 = vmatpush.msra.mxu0 %v571_v28  ;;  %v642_v18 = vld [vmem:[#allocation2 + $0x2b8] sm:$0xff]  ;;  %p1776_p7 = pnand %p1775_p1, %p1771_p2 }
  0x77   : > { %729 = vmatpush.msra.mxu1 %v605_v27  ;;  %v569_v32 = vld [vmem:[#allocation2 + $0x70] sm:$0xff]  ;;  %750 = vmatpush.msra.mxu2 %v635_v29  ;;  %v567_v36 = vld [vmem:[#allocation2 + $0x60] sm:$0xff]  ;;  %v578_v20 = vld [vmem:[#allocation2 + $0xb8] sm:$0xff] }
  0x78   : > { %v633_v33 = vld [vmem:[#allocation2 + $0x270] sm:$0xff]  ;;  %770 = vmatpush.msra.mxu3 %v667_v30  ;;  %v631_v37 = vld [vmem:[#allocation2 + $0x260] sm:$0xff]  ;;  %711 = vmatpush.msra.mxu0 %v569_v32  ;;  %v608_v21 = vld [vmem:[#allocation2 + $0x1a8] sm:$0xff] }
  0x79   : > { %v665_v34 = vld [vmem:[#allocation2 + $0x370] sm:$0xff]  ;;  %730 = vmatpush.msra.mxu1 %v603_v31  ;;  %751 = vmatpush.msra.mxu2 %v633_v33  ;;  %v663_v38 = vld [vmem:[#allocation2 + $0x360] sm:$0xff]  ;;  %v640_v22 = vld [vmem:[#allocation2 + $0x2a8] sm:$0xff] }
  0x7a   : > { %v601_v35 = vld [vmem:[#allocation2 + $0x170] sm:$0xff]  ;;  %v599_v39 = vld [vmem:[#allocation2 + $0x160] sm:$0xff]  ;;  %771 = vmatpush.msra.mxu3 %v665_v34  ;;  %712 = vmatpush.msra.mxu0 %v567_v36  ;;  %v576_v24 = vld [vmem:[#allocation2 + $0xa8] sm:$0xff] }
  0x7b   : > { %731 = vmatpush.msra.mxu1 %v601_v35  ;;  %v565_v40 = vld [vmem:[#allocation2 + $0x50] sm:$0xff]  ;;  %752 = vmatpush.msra.mxu2 %v631_v37  ;;  %v563_v44 = vld [vmem:[#allocation2 + $0x40] sm:$0xff]  ;;  %v606_v25 = vld [vmem:[#allocation2 + $0x198] sm:$0xff] }
  0x7c   : > { %v629_v41 = vld [vmem:[#allocation2 + $0x250] sm:$0xff]  ;;  %772 = vmatpush.msra.mxu3 %v663_v38  ;;  %v627_v45 = vld [vmem:[#allocation2 + $0x240] sm:$0xff]  ;;  %713 = vmatpush.msra.mxu0 %v565_v40  ;;  %v638_v26 = vld [vmem:[#allocation2 + $0x298] sm:$0xff] }
  0x7d   : > { %v661_v42 = vld [vmem:[#allocation2 + $0x350] sm:$0xff]  ;;  %732 = vmatpush.msra.mxu1 %v599_v39  ;;  %753 = vmatpush.msra.mxu2 %v629_v41  ;;  %v659_v46 = vld [vmem:[#allocation2 + $0x340] sm:$0xff]  ;;  %v574_v28 = vld [vmem:[#allocation2 + $0x98] sm:$0xff] }
  0x7e   : > { %v597_v43 = vld [vmem:[#allocation2 + $0x150] sm:$0xff]  ;;  %v595_v47 = vld [vmem:[#allocation2 + $0x140] sm:$0xff]  ;;  %773 = vmatpush.msra.mxu3 %v661_v42  ;;  %714 = vmatpush.msra.mxu0 %v563_v44  ;;  %v604_v29 = vld [vmem:[#allocation2 + $0x188] sm:$0xff] }
  0x7f   : > { %733 = vmatpush.msra.mxu1 %v597_v43  ;;  %v561_v48 = vld [vmem:[#allocation2 + $0x30] sm:$0xff]  ;;  %754 = vmatpush.msra.mxu2 %v627_v45  ;;  %v559_v52 = vld [vmem:[#allocation2 + $0x20] sm:$0xff]  ;;  %v636_v30 = vld [vmem:[#allocation2 + $0x288] sm:$0xff] }
  0x80   : > { %v625_v49 = vld [vmem:[#allocation2 + $0x230] sm:$0xff]  ;;  %774 = vmatpush.msra.mxu3 %v659_v46  ;;  %v623_v53 = vld [vmem:[#allocation2 + $0x220] sm:$0xff]  ;;  %715 = vmatpush.msra.mxu0 %v561_v48  ;;  %v682_v32 = vld [vmem:[#allocation2 + $0x3f8] sm:$0xff] }
  0x81   : > { %v657_v50 = vld [vmem:[#allocation2 + $0x330] sm:$0xff]  ;;  %734 = vmatpush.msra.mxu1 %v595_v47  ;;  %755 = vmatpush.msra.mxu2 %v625_v49  ;;  %v655_v54 = vld [vmem:[#allocation2 + $0x320] sm:$0xff]  ;;  %v572_v33 = vld [vmem:[#allocation2 + $0x88] sm:$0xff] }
  0x82   : > { %v593_v51 = vld [vmem:[#allocation2 + $0x130] sm:$0xff]  ;;  %v591_v55 = vld [vmem:[#allocation2 + $0x120] sm:$0xff]  ;;  %775 = vmatpush.msra.mxu3 %v657_v50  ;;  %716 = vmatpush.msra.mxu0 %v559_v52  ;;  %v602_v34 = vld [vmem:[#allocation2 + $0x178] sm:$0xff] }
  0x83   : > { %735 = vmatpush.msra.mxu1 %v593_v51  ;;  %v557_v56 = vld [vmem:[#allocation2 + $0x10] sm:$0xff]  ;;  %756 = vmatpush.msra.mxu2 %v623_v53  ;;  %v555_v60 = vld [vmem:[#allocation2] sm:$0xff]  ;;  %v634_v35 = vld [vmem:[#allocation2 + $0x278] sm:$0xff] }
  0x84   : > { %v621_v57 = vld [vmem:[#allocation2 + $0x210] sm:$0xff]  ;;  %776 = vmatpush.msra.mxu3 %v655_v54  ;;  %v619_v61 = vld [vmem:[#allocation2 + $0x200] sm:$0xff]  ;;  %717 = vmatpush.msra.mxu0 %v557_v56  ;;  %v680_v36 = vld [vmem:[#allocation2 + $0x3e8] sm:$0xff] }
  0x85   : > { %v653_v58 = vld [vmem:[#allocation2 + $0x310] sm:$0xff]  ;;  %736 = vmatpush.msra.mxu1 %v591_v55  ;;  %757 = vmatpush.msra.mxu2 %v621_v57  ;;  %v651_v62 = vld [vmem:[#allocation2 + $0x300] sm:$0xff]  ;;  %v570_v37 = vld [vmem:[#allocation2 + $0x78] sm:$0xff] }
  0x86   : > { %v589_v59 = vld [vmem:[#allocation2 + $0x110] sm:$0xff]  ;;  %777 = vmatpush.msra.mxu3 %v653_v58  ;;  %718 = vmatpush.msra.mxu0 %v555_v60  ;;  %v587_v2 = vld [vmem:[#allocation2 + $0x100] sm:$0xff]  ;;  %v600_v38 = vld [vmem:[#allocation2 + $0x168] sm:$0xff] }
  0x87   : > { %v697_v63 = vld [vmem:[#allocation2 + $0x470] sm:$0xff]  ;;  %737 = vmatpush.msra.mxu1 %v589_v59  ;;  %758 = vmatpush.msra.mxu2 %v619_v61  ;;  %v695_v3 = vld [vmem:[#allocation2 + $0x460] sm:$0xff]  ;;  %v632_v39 = vld [vmem:[#allocation2 + $0x268] sm:$0xff] }
  0x88   : > { %778 = vmatpush.msra.mxu3 %v651_v62  ;;  %791 = vmatpush.msrb.mxu0 %v697_v63  ;;  %v693_v7 = vld [vmem:[#allocation2 + $0x450] sm:$0xff]  ;;  %v691_v11 = vld [vmem:[#allocation2 + $0x440] sm:$0xff]  ;;  %v678_v40 = vld [vmem:[#allocation2 + $0x3d8] sm:$0xff] }
  0x89   : > { %823 = vmatpush.msrb.mxu2 %v618_v0  ;;  %738 = vmatpush.msra.mxu1 %v587_v2  ;;  %v689_v15 = vld [vmem:[#allocation2 + $0x430] sm:$0xff]  ;;  %v687_v19 = vld [vmem:[#allocation2 + $0x420] sm:$0xff]  ;;  %v568_v41 = vld [vmem:[#allocation2 + $0x68] sm:$0xff] }
  0x8a   : > { %843 = vmatpush.msrb.mxu3 %v650_v1  ;;  %792 = vmatpush.msrb.mxu0 %v695_v3  ;;  %v685_v23 = vld [vmem:[#allocation2 + $0x410] sm:$0xff]  ;;  %v683_v27 = vld [vmem:[#allocation2 + $0x400] sm:$0xff]  ;;  %v598_v42 = vld [vmem:[#allocation2 + $0x158] sm:$0xff] }
  0x8b   : > { %803 = vmatpush.msrb.mxu1 %v586_v4  ;;  %824 = vmatpush.msrb.mxu2 %v616_v5  ;;  %v2091_v31 = vld [vmem:[%s2084_s1] sm:$0xff]  ;;  %v676_v44 = vld [vmem:[#allocation2 + $0x3c8] sm:$0xff]  ;;  %v551_v58 = vld [vmem:[%s2084_s1 + $0x8] sm:$0xff] }
  0x8c   : > { %844 = vmatpush.msrb.mxu3 %v648_v6  ;;  %793 = vmatpush.msrb.mxu0 %v693_v7  ;;  %v630_v43 = vld [vmem:[#allocation2 + $0x258] sm:$0xff]  ;;  %v596_v46 = vld [vmem:[#allocation2 + $0x148] sm:$0xff]  ;;  %v916_v4 = vld [vmem:[#allocation5 + $0x60] sm:$0x1] }
  0x8d   : > { %804 = vmatpush.msrb.mxu1 %v584_v8  ;;  %825 = vmatpush.msrb.mxu2 %v614_v9  ;;  %v566_v45 = vld [vmem:[#allocation2 + $0x58] sm:$0xff]  ;;  %v628_v47 = vld [vmem:[#allocation2 + $0x248] sm:$0xff] }
  0x8e   : > { %845 = vmatpush.msrb.mxu3 %v646_v10  ;;  %794 = vmatpush.msrb.mxu0 %v691_v11  ;;  %v2095_v48 = vld [vmem:[%s2084_s1 + $0x10] sm:$0xff]  ;;  %v674_v49 = vld [vmem:[#allocation2 + $0x3b8] sm:$0xff]  ;;  %v2099_v54 = vld [vmem:[%s2084_s1 + $0x18] sm:$0xff] }
  0x8f   : > { %805 = vmatpush.msrb.mxu1 %v582_v12  ;;  %826 = vmatpush.msrb.mxu2 %v612_v13  ;;  %v564_v50 = vld [vmem:[#allocation2 + $0x48] sm:$0xff]  ;;  %v594_v51 = vld [vmem:[#allocation2 + $0x138] sm:$0xff]  ;;  %v914_v10 = vld [vmem:[#allocation5 + $0x50] sm:$0xff] }
  0x90   : > { %846 = vmatpush.msrb.mxu3 %v644_v14  ;;  %795 = vmatpush.msrb.mxu0 %v689_v15  ;;  %v626_v52 = vld [vmem:[#allocation2 + $0x238] sm:$0xff]  ;;  %v672_v53 = vld [vmem:[#allocation2 + $0x3a8] sm:$0xff]  ;;  %v912_v14 = vld [vmem:[#allocation5 + $0x40] sm:$0xff] }
  0x91   : > { %806 = vmatpush.msrb.mxu1 %v580_v16  ;;  %827 = vmatpush.msrb.mxu2 %v610_v17  ;;  %v562_v55 = vld [vmem:[#allocation2 + $0x38] sm:$0xff]  ;;  %v592_v56 = vld [vmem:[#allocation2 + $0x128] sm:$0xff] }
  0x92   : > { %847 = vmatpush.msrb.mxu3 %v642_v18  ;;  %796 = vmatpush.msrb.mxu0 %v687_v19  ;;  %v624_v57 = vld [vmem:[#allocation2 + $0x228] sm:$0xff]  ;;  %v670_v59 = vld [vmem:[#allocation2 + $0x398] sm:$0xff]  ;;  %v910_v18 = vld [vmem:[#allocation5 + $0x30] sm:$0xff] }
  0x93   : > { %807 = vmatpush.msrb.mxu1 %v578_v20  ;;  %828 = vmatpush.msrb.mxu2 %v608_v21  ;;  %v560_v60 = vld [vmem:[#allocation2 + $0x28] sm:$0xff]  ;;  %v590_v61 = vld [vmem:[#allocation2 + $0x118] sm:$0xff] }
  0x94   : > { %848 = vmatpush.msrb.mxu3 %v640_v22  ;;  %797 = vmatpush.msrb.mxu0 %v685_v23  ;;  %v622_v62 = vld [vmem:[#allocation2 + $0x218] sm:$0xff]  ;;  %v668_v63 = vld [vmem:[#allocation2 + $0x388] sm:$0xff]  ;;  %v908_v22 = vld [vmem:[#allocation5 + $0x20] sm:$0xff] }
  0x95   : > { %808 = vmatpush.msrb.mxu1 %v576_v24  ;;  %829 = vmatpush.msrb.mxu2 %v606_v25  ;;  %v558_v0 = vld [vmem:[#allocation2 + $0x18] sm:$0xff]  ;;  %v588_v1 = vld [vmem:[#allocation2 + $0x108] sm:$0xff] }
  0x96   : > { %849 = vmatpush.msrb.mxu3 %v638_v26  ;;  %798 = vmatpush.msrb.mxu0 %v683_v27  ;;  %v620_v2 = vld [vmem:[#allocation2 + $0x208] sm:$0xff]  ;;  %v666_v3 = vld [vmem:[#allocation2 + $0x378] sm:$0xff]  ;;  %v906_v26 = vld [vmem:[#allocation5 + $0x10] sm:$0xff] }
  0x97   : > { %809 = vmatpush.msrb.mxu1 %v574_v28  ;;  %830 = vmatpush.msrb.mxu2 %v604_v29  ;;  %v917_v5 = vld [vmem:[#allocation5 + $0x68] sm:$0x1]  ;;  %v2104_v7 = vld [vmem:[%s2084_s1 + $0x20] sm:$0xff]  ;;  %s1187_s1 = sshll.u32 %s545_s17, 4  ;;  %s1188_s1 = int_to_ptr.vmem [resolvable:$true] %s1187_s1 }
  0x98   : > { %850 = vmatpush.msrb.mxu3 %v636_v30  ;;  %719 = vmatmul.f32.vlgmr.msra.gmra.mxu0 %v2091_v31  ;;  %v556_v6 = vld [vmem:[#allocation2 + $0x8] sm:$0xff]  ;;  %v698_v9 = vld [vmem:[#allocation2 + $0x478] sm:$0xff]  ;;  %v904_v30 = vld [vmem:[#allocation5] sm:$0xff] }
  0x99   : > { %863 = vmatpush.msra.mxu0 %v682_v32  ;;  %810 = vmatpush.msrb.mxu1 %v572_v33  ;;  %v664_v8 = vld [vmem:[#allocation2 + $0x368] sm:$0xff]  ;;  %v915_v11 = vld [vmem:[#allocation5 + $0x58] sm:$0xff]  ;;  %v903_v33 = vld [vmem:[%s549_s4] sm:$0xff] }
  0x9a   : > { %831 = vmatpush.msrb.mxu2 %v602_v34  ;;  %851 = vmatpush.msrb.mxu3 %v634_v35  ;;  %v662_v12 = vld [vmem:[#allocation2 + $0x358] sm:$0xff]  ;;  %v696_v13 = vld [vmem:[#allocation2 + $0x468] sm:$0xff] }
  0x9b   : > { %864 = vmatpush.msra.mxu0 %v680_v36  ;;  %811 = vmatpush.msrb.mxu1 %v570_v37  ;;  %v913_v15 = vld [vmem:[#allocation5 + $0x48] sm:$0xff]  ;;  %v694_v17 = vld [vmem:[#allocation2 + $0x458] sm:$0xff]  ;;  %v972_v36 = vld [vmem:[%s497_s14 + $0x10] sm:$0xff] }
  0x9c   : > { %832 = vmatpush.msrb.mxu2 %v600_v38  ;;  %852 = vmatpush.msrb.mxu3 %v632_v39  ;;  %v660_v16 = vld [vmem:[#allocation2 + $0x348] sm:$0xff]  ;;  %v911_v19 = vld [vmem:[#allocation5 + $0x38] sm:$0xff]  ;;  %v970_v38 = vld [vmem:[%s497_s14] sm:$0xff] }
  0x9d   : > { %865 = vmatpush.msra.mxu0 %v678_v40  ;;  %812 = vmatpush.msrb.mxu1 %v568_v41  ;;  %v658_v20 = vld [vmem:[#allocation2 + $0x338] sm:$0xff]  ;;  %v692_v21 = vld [vmem:[#allocation2 + $0x448] sm:$0xff]  ;;  %v974_v40 = vld [vmem:[%s2173_s3] sm:$0xff]  ;;  %v1844_v41 = vmov 0  }
  0x9e   : > { %833 = vmatpush.msrb.mxu2 %v598_v42  ;;  %853 = vmatpush.msrb.mxu3 %v630_v43  ;;  %v909_v23 = vld [vmem:[#allocation5 + $0x28] sm:$0xff]  ;;  %v690_v25 = vld [vmem:[#allocation2 + $0x438] sm:$0xff]  ;;  %v969_v42 = vld [vmem:[#allocation7] sm:$0xff] }
  0x9f   : > { %866 = vmatpush.msra.mxu0 %v676_v44  ;;  %813 = vmatpush.msrb.mxu1 %v566_v45  ;;  %v656_v24 = vld [vmem:[#allocation2 + $0x328] sm:$0xff]  ;;  %v907_v27 = vld [vmem:[#allocation5 + $0x18] sm:$0xff]  ;;  %v1161_v43 = vld [vmem:[%s2177_s7] sm:$0xff] }
  0xa0   : > { %834 = vmatpush.msrb.mxu2 %v596_v46  ;;  %854 = vmatpush.msrb.mxu3 %v628_v47  ;;  %v654_v28 = vld [vmem:[#allocation2 + $0x318] sm:$0xff]  ;;  %v688_v29 = vld [vmem:[#allocation2 + $0x428] sm:$0xff] }
  0xa1   : > { %759 = vmatmul.f32.vlgmr.msra.gmra.mxu2 %v2095_v48  ;;  %867 = vmatpush.msra.mxu0 %v674_v49  ;;  %v905_v32 = vld [vmem:[#allocation5 + $0x8] sm:$0xff]  ;;  %v686_v35 = vld [vmem:[#allocation2 + $0x418] sm:$0xff] }
  0xa2   : > { %814 = vmatpush.msrb.mxu1 %v564_v50  ;;  %835 = vmatpush.msrb.mxu2 %v594_v51  ;;  %v652_v34 = vld [vmem:[#allocation2 + $0x308] sm:$0xff]  ;;  %v973_v37 = vld [vmem:[%s497_s14 + $0x18] sm:$0xff] }
  0xa3   : > { %855 = vmatpush.msrb.mxu3 %v626_v52  ;;  %868 = vmatpush.msra.mxu0 %v672_v53  ;;  %v971_v39 = vld [vmem:[%s497_s14 + $0x8] sm:$0xff]  ;;  %v1026_v53 = vld [vmem:[#allocation8] sm:$0xff] }
  0xa4   : > { %779 = vmatmul.f32.vlgmr.msra.gmra.mxu3 %v2099_v54  ;;  %815 = vmatpush.msrb.mxu1 %v562_v55 }
  0xa5   : > { %836 = vmatpush.msrb.mxu2 %v592_v56  ;;  %856 = vmatpush.msrb.mxu3 %v624_v57 }
  0xa6   : > { %739 = vmatmul.f32.vlgmr.msra.gmra.mxu1 %v551_v58  ;;  %869 = vmatpush.msra.mxu0 %v670_v59 }
  0xa7   : > { %816 = vmatpush.msrb.mxu1 %v560_v60  ;;  %837 = vmatpush.msrb.mxu2 %v590_v61 }
  0xa8   : > { %857 = vmatpush.msrb.mxu3 %v622_v62  ;;  %870 = vmatpush.msra.mxu0 %v668_v63 }
  0xa9   : > { %817 = vmatpush.msrb.mxu1 %v558_v0  ;;  %838 = vmatpush.msrb.mxu2 %v588_v1 }
  0xaa   : > { %858 = vmatpush.msrb.mxu3 %v620_v2  ;;  %871 = vmatpush.msra.mxu0 %v666_v3 }
  0xab   : > { %1374 = vmatpush.msk.msra.mxu2 %vm922_vm0, %v916_v4  ;;  %818 = vmatpush.msrb.mxu1 %v556_v6 }
  0xac   : > { %1376 = vmatpush.msk.msra.mxu3 %vm922_vm0, %v917_v5  ;;  %1372 = vmatmul.msk.f32.vlgmr.msrb.gmra.mxu0 %vm699_vm1, %v2104_v7 }
  0xad   : > { %872 = vmatpush.msra.mxu0 %v664_v8  ;;  %891 = vmatpush.msra.mxu1 %v698_v9  ;;  %v1115_v9 = vld [vmem:[#allocation11] sm:$0xff] }
  0xae   : > { %939 = vmatpush.msra.mxu2 %v914_v10  ;;  %959 = vmatpush.msra.mxu3 %v915_v11 }
  0xaf   : > { %839 = vmatmul.f32.vlgmr.msrb.gmra.mxu2 %v551_v58  ;;  %873 = vmatpush.msra.mxu0 %v662_v12 }
  0xb0   : > { %892 = vmatpush.msra.mxu1 %v696_v13  ;;  %940 = vmatpush.msra.mxu2 %v912_v14 }
  0xb1   : > { %960 = vmatpush.msra.mxu3 %v913_v15  ;;  %874 = vmatpush.msra.mxu0 %v660_v16 }
  0xb2   : > { %859 = vmatmul.f32.vlgmr.msrb.gmra.mxu3 %v2095_v48  ;;  %893 = vmatpush.msra.mxu1 %v694_v17 }
  0xb3   : > { %941 = vmatpush.msra.mxu2 %v910_v18  ;;  %961 = vmatpush.msra.mxu3 %v911_v19 }
  0xb4   : > { %875 = vmatpush.msra.mxu0 %v658_v20  ;;  %894 = vmatpush.msra.mxu1 %v692_v21 }
  0xb5   : > { %942 = vmatpush.msra.mxu2 %v908_v22  ;;  %962 = vmatpush.msra.mxu3 %v909_v23 }
  0xb6   : > { %819 = vmatmul.f32.vlgmr.msrb.gmra.mxu1 %v2091_v31  ;;  %876 = vmatpush.msra.mxu0 %v656_v24  ;;  %v684_v31 = vld [vmem:[#allocation2 + $0x408] sm:$0xff] }
  0xb7   : > { %895 = vmatpush.msra.mxu1 %v690_v25  ;;  %943 = vmatpush.msra.mxu2 %v906_v26 }
  0xb8   : > { %963 = vmatpush.msra.mxu3 %v907_v27  ;;  %877 = vmatpush.msra.mxu0 %v654_v28 }
  0xb9   : > { %896 = vmatpush.msra.mxu1 %v688_v29  ;;  %944 = vmatpush.msra.mxu2 %v904_v30 }
  0xba   : > { %964 = vmatpush.msra.mxu3 %v905_v32  ;;  %1375 = vmatmul.msk.f32.vlgmr.msra.gmra.mxu2 %vm918_vm2, %v903_v33 }
  0xbb   : > { %1377 = vmatmul.msk.f32.vlgmr.msra.gmra.mxu3 %vm918_vm2, %v903_v33  ;;  %878 = vmatpush.msra.mxu0 %v652_v34 }
  0xbc   : > { %897 = vmatpush.msra.mxu1 %v686_v35  ;;  %879 = vmatmul.f32.vlgmr.msra.gmra.mxu0 %v2099_v54 }
  0xbd   : > { %998 = vmatpush.msrb.mxu2 %v972_v36  ;;  %1018 = vmatpush.msrb.mxu3 %v973_v37 }
  0xbe   : > { %898 = vmatpush.msra.mxu1 %v684_v31  ;;  %1511 = vset.pattern.permute.xlu0 %v1844_v41 }
  0xbf   : > { %1373 = vmatmul.msk.f32.vlgmr.msra.gmra.mxu1 %vm699_vm1, %v2104_v7  ;;  %999 = vmatpush.msrb.mxu2 %v970_v38  ;;  %v1027_v7 = vld [vmem:[#allocation10] sm:$0xff] }
  0xc0   : > { %1019 = vmatpush.msrb.mxu3 %v971_v39  ;;  %977 = vperm.xlu0 %1511, %v974_v40  }
  0xc2   : > { %1378 = vmatmul.msk.f32.vlgmr.msrb.gmra.mxu2 %vm980_vm3, %v969_v42 }
  0xc3   : > { %1379 = vmatmul.msk.f32.vlgmr.msrb.gmra.mxu3 %vm980_vm3, %v969_v42 }
  0xc8   : > { %1164 = vperm.xlu0 %1511, %v1161_v43  }
 0x115   : > { %v720_v44 = vpop.f32.mrf.mxu0 }
 0x123   : > { %v740_v45 = vpop.f32.mrf.mxu1 }
 0x124   : > { %v741_v46 = vadd.f32 %v740_v45, %v720_v44  ;;  %v760_v47 = vpop.f32.mrf.mxu2 }
 0x126   : > { %v761_v48 = vadd.f32 %v760_v47, %v741_v46 }
 0x127   : > { %v780_v49 = vpop.f32.mrf.mxu3 }
 0x128   : > { %v781_v50 = vadd.f32 %v780_v49, %v761_v48 }
 0x129   : > { %v800_v51 = vpop.f32.mrf.mxu0 }
 0x12a   : > { %v801_v52 = vadd.f32 %v800_v51, %v781_v50 }
 0x12c   : > { %1090 = vmatpush.msra.mxu2 %v801_v52 }
 0x12d   : > { %1382 = vmatmul.msk.f32.vlgmr.msra.gmra.mxu2 %vm1028_vm4, %v1026_v53 }
 0x132   : > { %v840_v54 = vpop.f32.mrf.mxu2  ;;  %v978_v1 = vpop.permute.xlu0 %977 }
 0x133   : > { %v820_v55 = vpop.f32.mrf.mxu1 }
 0x134   : > { %v841_v56 = vadd.f32 %v840_v54, %v820_v55 }
 0x135   : > { %v860_v57 = vpop.f32.mrf.mxu3 }
 0x136   : > { %v861_v58 = vadd.f32 %v860_v57, %v841_v56 }
 0x139   : > { %v880_v59 = vpop.f32.mrf.mxu0 }
 0x13a   : > { %v881_v60 = vadd.f32 %v880_v59, %v861_v58  ;;  %v1165_v19 = vpop.permute.xlu0 %1164 }
 0x13c   : > { %v900_v61 = vpop.f32.mrf.mxu1 }
 0x13d   : > { %v901_v62 = vadd.f32 %v900_v61, %v881_v60  ;;  %v946_v63 = vpop.f32.mrf.mxu2 }
 0x13e   : > { %v966_v0 = vpop.f32.mrf.mxu3 }
 0x13f   : > { %1110 = vmatpush.msra.mxu3 %v901_v62 }
 0x140   : > { %1383 = vmatmul.msk.f32.vlgmr.msra.gmra.mxu3 %vm1028_vm4, %v1026_v53 }
 0x145   : > { %v1001_v2 = vpop.f32.mrf.mxu2 }
 0x146   : > { %v1002_v3 = vadd.f32 %v1001_v2, %v978_v1  ;;  %v1021_v4 = vpop.f32.mrf.mxu3 }
 0x147   : > { %v1022_v5 = vadd.f32 %v1021_v4, %v978_v1 }
 0x148   : > { %v1024_v6 = vmax.f32 %v1002_v3, 0.0 }
 0x149   : > { %v1025_v8 = vmax.f32 %v1022_v5, 0.0 }
 0x14a   : > { %1047 = vmatpush.msrb.mxu0 %v1024_v6 }
 0x14b   : > { %1067 = vmatpush.msrb.mxu1 %v1025_v8  ;;  %1380 = vmatmul.msk.f32.vlgmr.msrb.gmra.mxu0 %vm1028_vm4, %v1027_v7 }
 0x14c   : > { %1381 = vmatmul.msk.f32.vlgmr.msrb.gmra.mxu1 %vm1028_vm4, %v1027_v7  ;;  %1134 = vmatpush.msra.mxu0 %v946_v63 }
 0x14d   : > { %1154 = vmatpush.msra.mxu1 %v966_v0 }
 0x153   : > { %1384 = vmatmul.msk.f32.vlgmr.msra.gmra.mxu0 %vm1028_vm4, %v1115_v9 }
 0x154   : > { %1385 = vmatmul.msk.f32.vlgmr.msra.gmra.mxu1 %vm1028_vm4, %v1115_v9 }
 0x1b0   : > { %v1092_v12 = vpop.f32.mrf.mxu2 }
 0x1c3   : > { %v1112_v13 = vpop.f32.mrf.mxu3 }
 0x1c8   : > { %v1049_v10 = vpop.f32.mrf.mxu0 }
 0x1c9   : > { %v1069_v11 = vpop.f32.mrf.mxu1  ;;  %v1093_v14 = vadd.f32 %v1092_v12, %v1049_v10 }
 0x1ca   : > { %v1113_v15 = vadd.f32 %v1112_v13, %v1069_v11 }
 0x1d0   : > { %v1136_v16 = vpop.f32.mrf.mxu0 }
 0x1d1   : > { %v1159_v17 = vadd.f32 %v1136_v16, %v1093_v14  ;;  %v1156_v18 = vpop.f32.mrf.mxu1 }
 0x1d2   : > { %v1160_v20 = vadd.f32 %v1156_v18, %v1113_v15 }
 0x1d3   : > { %v1167_v21 = vadd.f32 %v1165_v19, %v1159_v17 }
 0x1d4   : > { %v1168_v22 = vadd.f32 %v1165_v19, %v1160_v20 }
 0x1d5   : > { %v1169_v23 = vmax.f32 %v1167_v21, 0.0 }
 0x1d6   : > { %v1170_v24 = vmax.f32 %v1168_v22, 0.0 }
 0x1d7   : > { %1171 = vst [vmem:[%s545_s17] sm:$0xff] %v1169_v23 }
 0x1d8   : > { %1172 = vst [vmem:[%s545_s17 + $0x8] sm:$0xff] %v1170_v24 }
 0x1d9   : > { %1779 = shalt.err (!%p1776_p7)
}
 0x1da   : > { %1424 = dma.vmem_to_hbm [thread:$0]  (%p1987_p0), %s1188_s1, 256, %s1190_s15, %s1174_s24  }
 0x1db PF: > { %s2223_s22 = sld [smem:[#allocation22_spill]]  ;;  %p2225_p10 = scmp.ge.s32.totalorder %s1834_s20, 2 }
 0x1dd   : > { %p1453_p8 = pnand %p2225_p10, %p1993_p5 }
 0x1df   : > { %p1454_p3 = pneg %p1453_p8 }
 0x1e1   : > { %s1201_s0 = sand.u32 1, %s2223_s22  }
 0x1e2   : > { %s1202_s2 = scalar_lea.sflag [#allocation4], %s1201_s0 }
 0x1e3   : > { %1817 = dma.done.wait (%p1454_p3), %s1202_s2, 256  }
 0x1e4   : > { %1819 = vsyncadd (%p1454_p3), %s1202_s2, 4294967040  ;;  %s2226_s20 = sld [smem:[#allocation24_spill]]  ;;  %s2229_s17 = smov %s1826_s18 }
 0x1e5   : > { %s2227_s12 = sld [smem:[#allocation23_spill]] }
 0x1e6   : > { %s2228_s19 = sld [smem:[#allocation25_spill]] }
 0x1ea   : > { %p25_p11 = scmp.ge.s32.totalorder %s2226_s20, 4  }
 0x1eb   : > { %s2230_s18 = smov %s2227_s12 }
 0x1ec   :  { %27 = sbr.rel (!%p25_p11) target bundleno = 12 (0xc), region = 146 }
 0x1f1   :  { %1208 = vsyncpa [#allocation3], 1 }
 0x1f2   :  { %1210 = vsyncpa [#allocation3 + $0x1], 1 }
 0x1f3   :  { %1211 = vsyncpa [#allocation6], 1 }
 0x1f4   :  { %1212 = vsyncpa [#allocation9], 1 }
 0x1f5   :  { %1213 = vsyncpa [#allocation12], 1 }
 0x1f6   :  { %1214 = vsyncpa [#allocation4], 1 }
 0x1f7   :  { %1216 = vsyncpa [#allocation4 + $0x1], 1 }

</bundles_post_ra>
